<compile_context>
chip_gen: v5e
topology: v5e:2x2
jax: 0.10.0
libtpu: 0.0.40
codegen_flags: <defaults>
</compile_context>

<pallas_src>
import jax
import jax.numpy as jnp
from jax.experimental import pallas as pl
from jax.experimental.pallas import tpu as pltpu

_IN_FEATURES = 28 * 28        # 784
_DEFAULT_TILE_ROWS = 2048     # safe on v5e / v6e / v7x with default scoped VMEM


def _round_up(n, m):
    return ((n + m - 1) // m) * m


def _regression_kernel(x_ref, w_ref, b_ref, o_ref):
    # x_ref: (TB, 784) VMEM tile, w_ref: (1, 784) VMEM (resident across the grid),
    # b_ref: (1,) SMEM scalar, o_ref: (TB, 1) VMEM.
    x = x_ref[...].astype(jnp.float32)           # in-kernel upcast (no-op for f32 input)
    w = w_ref[...].astype(jnp.float32)           # (1, 784) broadcast over rows (VPU)
    y = jnp.sum(x * w, axis=-1, keepdims=True)   # VPU mul + XLU lane reduce -> (TB, 1)
    y = y + b_ref[0]                             # scalar bias from SMEM
    y = jnp.maximum(y, 0.0)                      # ReLU
    y = jnp.minimum(y, 9.0)                      # clip(max=9)
    o_ref[...] = y.astype(o_ref.dtype)


def regression_forward(x_nchw, weight, bias, *, tile_rows=_DEFAULT_TILE_ROWS):
    """x_nchw: (B, 1, 28, 28); weight: (1, 784); bias: (1,) -> (B, 1) f32."""
    B = x_nchw.shape[0]
    F = _IN_FEATURES

    # torch.flatten(x, start_dim=1); keep the incoming dtype for the HBM->VMEM DMA.
    x_flat = x_nchw.reshape(B, F)
    w_row = weight.reshape(1, F).astype(jnp.float32)   # (1, 784), stays VMEM-resident
    b = bias.reshape(1).astype(jnp.float32)            # scalar, lives in SMEM

    # Batch tile: multiple of 8 sublanes, capped so the double-buffered x tile fits
    # comfortably in scoped VMEM on every generation.
    tb = min(tile_rows, _round_up(B, 8))
    b_padded = _round_up(B, tb)
    if b_padded != B:
        x_flat = jnp.pad(x_flat, ((0, b_padded - B), (0, 0)))
    num_tiles = b_padded // tb

    out = pl.pallas_call(
        _regression_kernel,
        out_shape=jax.ShapeDtypeStruct((b_padded, 1), jnp.float32),
        grid_spec=pl.GridSpec(
            grid=(num_tiles,),
            in_specs=[
                pl.BlockSpec((tb, F), lambda i: (i, 0)),            # x: tiled over batch
                pl.BlockSpec((1, F), lambda i: (0, 0)),             # weight: resident
                pl.BlockSpec(memory_space=pltpu.MemorySpace.SMEM),  # bias scalar
            ],
            out_specs=pl.BlockSpec((tb, 1), lambda i: (i, 0)),
        ),
        compiler_params=pltpu.CompilerParams(
            dimension_semantics=("parallel",),   # independent batch tiles -> megacore
        ),
    )(x_flat, w_row, b)

    return out[:B]


if __name__ == "__main__":
    key = jax.random.PRNGKey(0)
    k_x, k_w, k_b, k_x2 = jax.random.split(key, 4)

    fan_in = _IN_FEATURES
    bound = 1.0 / (fan_in ** 0.5)
    weight = jax.random.uniform(k_w, (1, fan_in), minval=-bound, maxval=bound,
                                dtype=jnp.float32)
    bias = jax.random.uniform(k_b, (1,), minval=-bound, maxval=bound,
                              dtype=jnp.float32)

    def ref_fn(xx):
        flat = xx.reshape(xx.shape[0], fan_in)
        return jnp.minimum(jnp.maximum(flat @ weight.T + bias, 0.0), 9.0)

    # Small-batch path (single tile).
    B = 8
    x = jax.random.normal(k_x, (B, 1, 28, 28), dtype=jnp.float32)  # NCHW, MNIST-like
    out = jax.block_until_ready(regression_forward(x, weight, bias))
    assert out.shape == (B, 1)
    assert jnp.allclose(out, ref_fn(x), atol=1e-5, rtol=1e-5)

    # Multi-tile + tail-padding path (tiny tile to exercise the pipelined parallel grid).
    B2 = 20
    x2 = jax.random.normal(k_x2, (B2, 1, 28, 28), dtype=jnp.float32)
    out2 = jax.block_until_ready(regression_forward(x2, weight, bias, tile_rows=8))
    assert out2.shape == (B2, 1)
    assert jnp.allclose(out2, ref_fn(x2), atol=1e-5, rtol=1e-5)

    print("KERNEL_OK")
</pallas_src>

<mosaic_0001>
module attributes {stable_mosaic.version = 11 : i64} {
  func.func @_regression_kernel(%arg0: i32, %arg1: memref<8x784xf32, #tpu.memory_space<vmem>>, %arg2: memref<1x784xf32, #tpu.memory_space<vmem>>, %arg3: memref<1xf32, #tpu.memory_space<smem>>, %arg4: memref<8x1xf32, #tpu.memory_space<vmem>>) attributes {dimension_semantics = [#tpu.dimension_semantics<parallel>], iteration_bounds = array<i64: 1>, scalar_prefetch = 0 : i64, scratch_operands = 0 : i64, tpu.core_type = #tpu.core_type<tc>, window_params = [{transform_indices = @transform_0, window_bounds = array<i64: 8, 784>}, {pipeline_mode = #tpu.pipeline_mode<synchronous>, transform_indices = @transform_1, window_bounds = array<i64: 1, 784>}, {transform_indices = @transform_2, window_bounds = array<i64: 1>}, {transform_indices = @transform_3, window_bounds = array<i64: 8, 1>}]} {
    %c0 = arith.constant 0 : index
    %c0_0 = arith.constant 0 : index
    %0 = vector.load %arg1[%c0, %c0_0] : memref<8x784xf32, #tpu.memory_space<vmem>>, vector<8x784xf32>
    %c0_1 = arith.constant 0 : index
    %c0_2 = arith.constant 0 : index
    %1 = vector.load %arg2[%c0_1, %c0_2] : memref<1x784xf32, #tpu.memory_space<vmem>>, vector<1x784xf32>
    %2 = vector.broadcast %1 : vector<1x784xf32> to vector<8x784xf32>
    %3 = arith.mulf %0, %2 : vector<8x784xf32>
    %cst = arith.constant dense<0.000000e+00> : vector<8xf32>
    %4 = vector.multi_reduction <add>, %3, %cst [1] : vector<8x784xf32> to vector<8xf32>
    %5 = vector.shape_cast %4 : vector<8xf32> to vector<8x1xf32>
    %c0_3 = arith.constant 0 : index
    %6 = memref.load %arg3[%c0_3] : memref<1xf32, #tpu.memory_space<smem>>
    %7 = vector.broadcast %6 : f32 to vector<8x1xf32>
    %8 = arith.addf %5, %7 : vector<8x1xf32>
    %cst_4 = arith.constant 0.000000e+00 : f32
    %9 = vector.broadcast %cst_4 : f32 to vector<8x1xf32>
    %10 = arith.maximumf %8, %9 : vector<8x1xf32>
    %cst_5 = arith.constant 9.000000e+00 : f32
    %11 = vector.broadcast %cst_5 : f32 to vector<8x1xf32>
    %12 = arith.minimumf %10, %11 : vector<8x1xf32>
    %c0_6 = arith.constant 0 : index
    %c0_7 = arith.constant 0 : index
    %13 = vector.load %arg4[%c0_6, %c0_7] : memref<8x1xf32, #tpu.memory_space<vmem>>, vector<8x1xf32>
    tpu.vector_store %arg4[%c0_6, %c0_7], %12 {strides = array<i32>} : memref<8x1xf32, #tpu.memory_space<vmem>>, vector<8x1xf32>,
    return
  }
  func.func @transform_0(%arg0: i32) -> (i32, i32) {
    %c0_i32 = arith.constant 0 : i32
    %c0_i32_0 = arith.constant 0 : i32
    return %arg0, %c0_i32 : i32, i32
  }
  func.func @transform_1(%arg0: i32) -> (i32, i32) {
    %c0_i32 = arith.constant 0 : i32
    %c0_i32_0 = arith.constant 0 : i32
    %c0_i32_1 = arith.constant 0 : i32
    return %c0_i32, %c0_i32_0 : i32, i32
  }
  func.func @transform_2(%arg0: i32) -> i32 {
    %c0_i32 = arith.constant 0 : i32
    %c0_i32_0 = arith.constant 0 : i32
    return %c0_i32 : i32
  }
  func.func @transform_3(%arg0: i32) -> (i32, i32) {
    %c0_i32 = arith.constant 0 : i32
    %c0_i32_0 = arith.constant 0 : i32
    return %arg0, %c0_i32 : i32, i32
  }
}

</mosaic_0001>

<bundles_post_ra>
// kernel: tpu_custom_call.1
= control target key start
LH: loop header
LB: loop body
LE: loop exit
PB: predicated region body
PF: predicated region fallthrough
CT: control target
= control target key end

     0   :  { %9 = vsyncpa [#allocation4], 0  ;;  %s184_s0 = inlined_call_operand.hbm [shape: f32[8,784], index: 0, kind: input, shape index: {}]   ;;  %s185_s1 = inlined_call_operand.hbm [shape: f32[1,784], index: 1, kind: input, shape index: {}]   ;;  %s186_s2 = inlined_call_operand.<no memory space> [shape: f32[1], index: 2, kind: input, shape index: {}]   ;;  %s187_s3 = inlined_call_operand.vmem [shape: f32[8,1], index: 3, kind: output, shape index: {}]  }
   0x1   :  { %s16_s14 = sshll.u32 %s184_s0, 4  ;;  %s17_s14 = int_to_ptr.hbm [resolvable:$true] %s16_s14 }
   0x2   :  { %10 = vsyncpa [#allocation6], 0  ;;  %s150_s15 = smov [#allocation3]   ;;  %s27_s19 = sshll.u32 %s185_s1, 4  ;;  %s28_s19 = int_to_ptr.hbm [resolvable:$true] %s27_s19 }
   0x3   :  { %s18_s16 = sshll.u32 %s150_s15, 4  ;;  %s151_s20 = smov [#allocation5]   ;;  %s19_s16 = int_to_ptr.vmem [resolvable:$true] %s18_s16 }
   0x4   :  { %21 = dma.hbm_to_vmem [thread:$0]  %s17_s14, 896, %s19_s16, [#allocation4]  }
   0x5   :  { %s29_s21 = sshll.u32 %s151_s20, 4  ;;  %s30_s21 = int_to_ptr.vmem [resolvable:$true] %s29_s21 }
   0x6   :  { %32 = dma.hbm_to_vmem [thread:$0]  %s28_s19, 112, %s30_s21, [#allocation6]  }
   0x7   :  { %146 = dma.done.wait [#allocation4], 896  }
   0x8   :  { %147 = vsyncadd [#allocation4], 4294966400 }
   0x9   :  { %148 = dma.done.wait [#allocation6], 112  }
   0xa   :  { %149 = vsyncadd [#allocation6], 4294967184  ;;  %v43_v0 = vld [vmem:[#allocation3] sm:$0xff]  ;;  %v44_v1 = vld [vmem:[#allocation3 + $0x8] sm:$0xff]  ;;  %vm78_vm0 = vcmask 130048   ;;  %v84_v29 = vstv %s186_s2  ;;  %vm88_vm1 = vcmask 7168  }
   0xb   :  { %v45_v2 = vld [vmem:[#allocation3 + $0x10] sm:$0xff]  ;;  %v50_v3 = vld [vmem:[#allocation5] sm:$0x7f]  ;;  %v47_v13 = vld [vmem:[#allocation3 + $0x20] sm:$0xff] }
   0xc   :  { %v52_v4 = vperm.slane %v50_v3, 0  ;;  %v53_v5 = vperm.slane %v50_v3, 1  ;;  %v54_v6 = vperm.slane %v50_v3, 2  ;;  %v55_v7 = vperm.slane %v50_v3, 3  ;;  %v46_v8 = vld [vmem:[#allocation3 + $0x18] sm:$0xff]  ;;  %v49_v15 = vld [vmem:[#allocation3 + $0x30] sm:$0xff] }
   0xd   :  { %v56_v9 = vperm.slane %v50_v3, 4  ;;  %v58_v14 = vperm.slane %v50_v3, 6  ;;  %v57_v16 = vperm.slane %v50_v3, 5  ;;  %v48_v19 = vld [vmem:[#allocation3 + $0x28] sm:$0xff] }
   0xe   :  { %v66_v10 = vmul.f32 %v52_v4, %v43_v0  ;;  %v67_v11 = vmul.f32 %v53_v5, %v44_v1  ;;  %v68_v12 = vmul.f32 %v54_v6, %v45_v2  ;;  %v69_v17 = vmul.f32 %v55_v7, %v46_v8 }
   0xf   :  { %v70_v20 = vmul.f32 %v56_v9, %v47_v13  ;;  %v72_v22 = vmul.f32 %v58_v14, %v49_v15  ;;  %v71_v23 = vmul.f32 %v57_v16, %v48_v19 }
  0x10   :  { %v73_v18 = vadd.f32 %v67_v11, %v66_v10 }
  0x11   :  { %v79_v26 = vsel %vm78_vm0, %v72_v22, 0.0 }
  0x12   :  { %v74_v21 = vadd.f32 %v73_v18, %v68_v12 }
  0x14   :  { %v75_v24 = vadd.f32 %v74_v21, %v69_v17 }
  0x16   :  { %v76_v25 = vadd.f32 %v75_v24, %v70_v20 }
  0x18   :  { %v77_v27 = vadd.f32 %v76_v25, %v71_v23 }
  0x1a   :  { %v80_v28 = vadd.f32 %v79_v26, %v77_v27 }
  0x1c   :  { %81 = vadd.xlane.f32.xlu0 %v80_v28 }
  0x8f   :  { %v82_v30 = vpop.xlane.xlu0 %81 }
  0x90   :  { %v85_v31 = vadd.f32 %v84_v29, %v82_v30 }
  0x92   :  { %v86_v32 = vmax.f32 %v85_v31, 0.0 }
  0x94   :  { %v87_v33 = vmin.f32 %v86_v32, 9.0 }
  0x96   :  { %89 = vst.msk [vmem:[%s187_s3] sm:$0xff] %vm88_vm1, %v87_v33 }
  0x97   :  { %94 = vsyncpa [#allocation4], 1 }
  0x98   :  { %95 = vsyncpa [#allocation6], 1 }

</bundles_post_ra>
